<compile_context>
chip_gen: v7x
topology: tpu7x:2x2x1
jax: 0.10.0
libtpu: 0.0.40
codegen_flags: <defaults>
</compile_context>

<pallas_src>
import jax
import jax.numpy as jnp
from jax import lax
from jax.experimental import pallas as pl
from jax.experimental.pallas import tpu as pltpu


def convlstm_kernel(w_ref, b_ref, patches_ref, c_ref, h_out_ref, c_out_ref):
    # w_ref:       (Cout, K)   bf16   K = KH*KW*Cin, Cout = 4*Ch, gates [i,f,o,g]
    # b_ref:       (Cout, 1)   f32
    # patches_ref: (K, TM)     bf16   im2col columns for this M tile
    # c_ref:       (Ch, TM)    f32    previous cell state
    # h_out_ref:   (Ch, TM)    f32    new hidden
    # c_out_ref:   (Ch, TM)    f32    new cell
    ch = c_ref.shape[0]

    # Single fused contraction over K = KH*KW*Cin on the MXU, f32 accumulation.
    acc = jnp.dot(w_ref[...], patches_ref[...],
                  preferred_element_type=jnp.float32)          # (Cout, TM)
    acc = acc + b_ref[...]                                      # bias broadcast

    # Gate slices are sublane row-blocks; lanes (M) stay fully dense.
    cc_i = acc[0 * ch:1 * ch, :]
    cc_f = acc[1 * ch:2 * ch, :]
    cc_o = acc[2 * ch:3 * ch, :]
    cc_g = acc[3 * ch:4 * ch, :]

    input_gate = jax.nn.sigmoid(cc_i)
    forget_gate = jax.nn.sigmoid(cc_f)
    output_gate = jax.nn.sigmoid(cc_o)
    state_gate = jnp.tanh(cc_g)

    cell_new = forget_gate * c_ref[...] + input_gate * state_gate
    hidden_new = output_gate * jnp.tanh(cell_new)

    c_out_ref[...] = cell_new
    h_out_ref[...] = hidden_new


def conv_lstm_cell(inputs, hidden, cell, weight, bias,
                   kernel_size=5, padding=2, tm=512):
    """Pallas ConvLSTMCell forward.

    inputs: (N, Cx, H, W)   hidden/cell: (N, Ch, H, W)   -- NCHW, like PyTorch
    weight: (4*Ch, Ch+Cx, KH, KW) (torch Conv2d OIHW), bias: (4*Ch,)
    Returns (hidden_new, cell_new), both (N, Ch, H, W).
    """
    n, cx, h, w = inputs.shape
    ch = hidden.shape[1]
    cin = ch + cx
    cout = 4 * ch
    kh = kw = kernel_size
    m = n * h * w
    k_total = kh * kw * cin

    # Lane-axis tile size: a multiple of 128, no larger than needed.
    tm = max(128, (min(tm, max(m, 128)) // 128) * 128)
    m_pad = pl.cdiv(m, tm) * tm
    grid_m = m_pad // tm

    # --- glue (plain XLA): layout conversion + transposed im2col ---
    # torch.cat((hidden, inputs), dim=1) -> NHWC -> spatial pad.
    x = jnp.concatenate([hidden, inputs], axis=1)                  # (N, Cin, H, W)
    x = jnp.transpose(x, (0, 2, 3, 1))                             # (N, H, W, Cin)
    xp = jnp.pad(x, ((0, 0), (padding, padding), (padding, padding), (0, 0)))

    # im2col, transposed: rows are (tap, in-channel), columns are M = N*H*W.
    # TODO(synk): for large shapes, replace the replicated im2col with in-kernel
    # shifted-window reads of the padded NHWC tensor (per-tap pl.ds offsets).
    cols = []
    for i in range(kh):
        for j in range(kw):
            win = xp[:, i:i + h, j:j + w, :]                       # (N, H, W, Cin)
            cols.append(jnp.moveaxis(win, 3, 0).reshape(cin, m))   # (Cin, M)
    patches_t = jnp.concatenate(cols, axis=0).astype(jnp.bfloat16)  # (K, M)

    # torch OIHW -> (Cout, KH, KW, Cin) -> (Cout, K); same K ordering as above.
    w_t = jnp.transpose(weight, (0, 2, 3, 1)).reshape(cout, k_total)
    w_t = w_t.astype(jnp.bfloat16)
    b_t = bias.reshape(cout, 1).astype(jnp.float32)

    c_t = jnp.transpose(cell, (1, 0, 2, 3)).reshape(ch, m).astype(jnp.float32)

    if m_pad != m:
        patches_t = jnp.pad(patches_t, ((0, 0), (0, m_pad - m)))
        c_t = jnp.pad(c_t, ((0, 0), (0, m_pad - m)))

    h_t, c_new_t = pl.pallas_call(
        convlstm_kernel,
        out_shape=(
            jax.ShapeDtypeStruct((ch, m_pad), jnp.float32),
            jax.ShapeDtypeStruct((ch, m_pad), jnp.float32),
        ),
        grid=(grid_m,),
        in_specs=[
            pl.BlockSpec((cout, k_total), lambda i: (0, 0)),   # weights (resident)
            pl.BlockSpec((cout, 1), lambda i: (0, 0)),         # bias    (resident)
            pl.BlockSpec((k_total, tm), lambda i: (0, i)),     # im2col M-tile
            pl.BlockSpec((ch, tm), lambda i: (0, i)),          # prev cell M-tile
        ],
        out_specs=(
            pl.BlockSpec((ch, tm), lambda i: (0, i)),
            pl.BlockSpec((ch, tm), lambda i: (0, i)),
        ),
        compiler_params=pltpu.CompilerParams(
            dimension_semantics=("parallel",),     # v7x: shard M across 2 TCs
            vmem_limit_bytes=32 * 1024 * 1024,     # explicit; fits v7x's 64 MiB
        ),
    )(w_t, b_t, patches_t, c_t)

    # back to NCHW
    h_new = jnp.transpose(h_t[:, :m].reshape(ch, n, h, w), (1, 0, 2, 3))
    c_new = jnp.transpose(c_new_t[:, :m].reshape(ch, n, h, w), (1, 0, 2, 3))
    return h_new, c_new


def conv_lstm_cell_ref(inputs, hidden, cell, weight, bias, padding=2,
                       quantize_bf16=True):
    """Pure-JAX reference mirroring the PyTorch forward (NCHW).

    With quantize_bf16=True the conv inputs/weights are rounded to bf16 (then
    computed in f32), matching the kernel's MXU precision choice so the
    comparison isolates implementation error from quantization error.
    """
    x = jnp.concatenate([hidden, inputs], axis=1)
    wq = weight
    if quantize_bf16:
        x = x.astype(jnp.bfloat16).astype(jnp.float32)
        wq = weight.astype(jnp.bfloat16).astype(jnp.float32)
    y = lax.conv_general_dilated(
        x, wq, window_strides=(1, 1),
        padding=[(padding, padding), (padding, padding)],
        dimension_numbers=("NCHW", "OIHW", "NCHW"),
    ) + bias.reshape(1, -1, 1, 1)
    ch = hidden.shape[1]
    cc_i, cc_f, cc_o, cc_g = jnp.split(y, 4, axis=1)
    i = jax.nn.sigmoid(cc_i)
    f = jax.nn.sigmoid(cc_f)
    o = jax.nn.sigmoid(cc_o)
    g = jnp.tanh(cc_g)
    c_new = f * cell + i * g
    h_new = o * jnp.tanh(c_new)
    return h_new, c_new


if __name__ == "__main__":
    # Small shapes: batch=2, input channels=4, hidden channels=8, spatial 16x16.
    N, CX, CH, H, W = 2, 4, 8, 16, 16
    KS, PAD = 5, 2
    CIN, COUT = CH + CX, 4 * CH

    key = jax.random.PRNGKey(0)
    kx, kh_, kc, kw_, kb = jax.random.split(key, 5)

    x = jax.random.normal(kx, (N, CX, H, W), jnp.float32)
    h0 = jax.random.normal(kh_, (N, CH, H, W), jnp.float32)
    c0 = jax.random.normal(kc, (N, CH, H, W), jnp.float32)

    # Deterministic synthetic conv parameters (torch Conv2d shapes: OIHW).
    weight = 0.05 * jax.random.normal(kw_, (COUT, CIN, KS, KS), jnp.float32)
    bias = 0.1 * jax.random.normal(kb, (COUT,), jnp.float32)

    # tm=256 -> a 2-step grid at this small size (exercises the M tiling).
    h_new, c_new = conv_lstm_cell(x, h0, c0, weight, bias, KS, PAD, tm=256)
    jax.block_until_ready((h_new, c_new))

    # Reference with the same bf16 input/weight rounding, f32 math.
    h_ref, c_ref = conv_lstm_cell_ref(x, h0, c0, weight, bias, PAD)

    assert h_new.shape == (N, CH, H, W) and c_new.shape == (N, CH, H, W)
    assert bool(jnp.all(jnp.isfinite(h_new))) and bool(jnp.all(jnp.isfinite(c_new)))
    assert jnp.allclose(h_new, h_ref, atol=2e-3, rtol=2e-3), \
        float(jnp.max(jnp.abs(h_new - h_ref)))
    assert jnp.allclose(c_new, c_ref, atol=2e-3, rtol=2e-3), \
        float(jnp.max(jnp.abs(c_new - c_ref)))

    print("KERNEL_OK")
</pallas_src>

<mosaic_0001>
module attributes {stable_mosaic.version = 11 : i64} {
  func.func @convlstm_kernel(%arg0: i32, %arg1: memref<32x300xbf16, #tpu.memory_space<vmem>>, %arg2: memref<32x1xf32, #tpu.memory_space<vmem>>, %arg3: memref<300x256xbf16, #tpu.memory_space<vmem>>, %arg4: memref<8x256xf32, #tpu.memory_space<vmem>>, %arg5: memref<8x256xf32, #tpu.memory_space<vmem>>, %arg6: memref<8x256xf32, #tpu.memory_space<vmem>>) attributes {dimension_semantics = [#tpu.dimension_semantics<parallel>], iteration_bounds = array<i64: 2>, scalar_prefetch = 0 : i64, scratch_operands = 0 : i64, tpu.core_type = #tpu.core_type<tc>, window_params = [{pipeline_mode = #tpu.pipeline_mode<synchronous>, transform_indices = @transform_0, window_bounds = array<i64: 32, 300>}, {pipeline_mode = #tpu.pipeline_mode<synchronous>, transform_indices = @transform_1, window_bounds = array<i64: 32, 1>}, {transform_indices = @transform_2, window_bounds = array<i64: 300, 256>}, {transform_indices = @transform_3, window_bounds = array<i64: 8, 256>}, {transform_indices = @transform_4, window_bounds = array<i64: 8, 256>}, {transform_indices = @transform_5, window_bounds = array<i64: 8, 256>}]} {
    %c0 = arith.constant 0 : index
    %c0_0 = arith.constant 0 : index
    %0 = vector.load %arg1[%c0, %c0_0] : memref<32x300xbf16, #tpu.memory_space<vmem>>, vector<32x300xbf16>
    %c0_1 = arith.constant 0 : index
    %c0_2 = arith.constant 0 : index
    %1 = vector.load %arg3[%c0_1, %c0_2] : memref<300x256xbf16, #tpu.memory_space<vmem>>, vector<300x256xbf16>
    %cst = arith.constant dense<0.000000e+00> : vector<32x256xf32>
    %2 = tpu.matmul %0, %1, %cst {dimension_numbers = #tpu.dot_dimension_numbers<[1], [0], [0], [1], [0, 0, 1, 1], [], []>} : vector<32x300xbf16>, vector<300x256xbf16>, vector<32x256xf32> -> vector<32x256xf32>
    %c0_3 = arith.constant 0 : index
    %c0_4 = arith.constant 0 : index
    %3 = vector.load %arg2[%c0_3, %c0_4] : memref<32x1xf32, #tpu.memory_space<vmem>>, vector<32x1xf32>
    %4 = vector.broadcast %3 : vector<32x1xf32> to vector<32x256xf32>
    %5 = arith.addf %2, %4 : vector<32x256xf32>
    %6 = vector.extract_strided_slice %5 {offsets = [0, 0], sizes = [8, 256], strides = [1, 1]} : vector<32x256xf32> to vector<8x256xf32>
    %7 = vector.extract_strided_slice %5 {offsets = [8, 0], sizes = [8, 256], strides = [1, 1]} : vector<32x256xf32> to vector<8x256xf32>
    %8 = vector.extract_strided_slice %5 {offsets = [16, 0], sizes = [8, 256], strides = [1, 1]} : vector<32x256xf32> to vector<8x256xf32>
    %9 = vector.extract_strided_slice %5 {offsets = [24, 0], sizes = [8, 256], strides = [1, 1]} : vector<32x256xf32> to vector<8x256xf32>
    %10 = arith.negf %6 : vector<8x256xf32>
    %11 = math.exp %10 : vector<8x256xf32>
    %cst_5 = arith.constant 1.000000e+00 : f32
    %12 = vector.broadcast %cst_5 : f32 to vector<8x256xf32>
    %13 = arith.addf %12, %11 : vector<8x256xf32>
    %14 = arith.divf %12, %13 : vector<8x256xf32>
    %15 = arith.negf %7 : vector<8x256xf32>
    %16 = math.exp %15 : vector<8x256xf32>
    %cst_6 = arith.constant 1.000000e+00 : f32
    %17 = vector.broadcast %cst_6 : f32 to vector<8x256xf32>
    %18 = arith.addf %17, %16 : vector<8x256xf32>
    %19 = arith.divf %17, %18 : vector<8x256xf32>
    %20 = arith.negf %8 : vector<8x256xf32>
    %21 = math.exp %20 : vector<8x256xf32>
    %cst_7 = arith.constant 1.000000e+00 : f32
    %22 = vector.broadcast %cst_7 : f32 to vector<8x256xf32>
    %23 = arith.addf %22, %21 : vector<8x256xf32>
    %24 = arith.divf %22, %23 : vector<8x256xf32>
    %25 = math.tanh %9 : vector<8x256xf32>
    %c0_8 = arith.constant 0 : index
    %c0_9 = arith.constant 0 : index
    %26 = vector.load %arg4[%c0_8, %c0_9] : memref<8x256xf32, #tpu.memory_space<vmem>>, vector<8x256xf32>
    %27 = arith.mulf %19, %26 : vector<8x256xf32>
    %28 = arith.mulf %14, %25 : vector<8x256xf32>
    %29 = arith.addf %27, %28 : vector<8x256xf32>
    %30 = math.tanh %29 : vector<8x256xf32>
    %31 = arith.mulf %24, %30 : vector<8x256xf32>
    %c0_10 = arith.constant 0 : index
    %c0_11 = arith.constant 0 : index
    %32 = vector.load %arg6[%c0_10, %c0_11] : memref<8x256xf32, #tpu.memory_space<vmem>>, vector<8x256xf32>
    tpu.vector_store %arg6[%c0_10, %c0_11], %29 {strides = array<i32>} : memref<8x256xf32, #tpu.memory_space<vmem>>, vector<8x256xf32>,
    %c0_12 = arith.constant 0 : index
    %c0_13 = arith.constant 0 : index
    %33 = vector.load %arg5[%c0_12, %c0_13] : memref<8x256xf32, #tpu.memory_space<vmem>>, vector<8x256xf32>
    tpu.vector_store %arg5[%c0_12, %c0_13], %31 {strides = array<i32>} : memref<8x256xf32, #tpu.memory_space<vmem>>, vector<8x256xf32>,
    return
  }
  func.func @transform_0(%arg0: i32) -> (i32, i32) {
    %c0_i32 = arith.constant 0 : i32
    %c0_i32_0 = arith.constant 0 : i32
    %c0_i32_1 = arith.constant 0 : i32
    return %c0_i32, %c0_i32_0 : i32, i32
  }
  func.func @transform_1(%arg0: i32) -> (i32, i32) {
    %c0_i32 = arith.constant 0 : i32
    %c0_i32_0 = arith.constant 0 : i32
    %c0_i32_1 = arith.constant 0 : i32
    return %c0_i32, %c0_i32_0 : i32, i32
  }
  func.func @transform_2(%arg0: i32) -> (i32, i32) {
    %c0_i32 = arith.constant 0 : i32
    %c0_i32_0 = arith.constant 0 : i32
    return %c0_i32, %arg0 : i32, i32
  }
  func.func @transform_3(%arg0: i32) -> (i32, i32) {
    %c0_i32 = arith.constant 0 : i32
    %c0_i32_0 = arith.constant 0 : i32
    return %c0_i32, %arg0 : i32, i32
  }
  func.func @transform_4(%arg0: i32) -> (i32, i32) {
    %c0_i32 = arith.constant 0 : i32
    %c0_i32_0 = arith.constant 0 : i32
    return %c0_i32, %arg0 : i32, i32
  }
  func.func @transform_5(%arg0: i32) -> (i32, i32) {
    %c0_i32 = arith.constant 0 : i32
    %c0_i32_0 = arith.constant 0 : i32
    return %c0_i32, %arg0 : i32, i32
  }
}

</mosaic_0001>

<bundles_post_ra>
// kernel: tpu_custom_call.1
= control target key start
LH: loop header
LB: loop body
LE: loop exit
PB: predicated region body
PF: predicated region fallthrough
CT: control target
= control target key end

     0   :  { %11 = vsyncpa [#allocation3], 0  ;;  %s1674_s0 = inlined_call_operand.hbm [shape: bf16[32,300], index: 0, kind: input, shape index: {}]   ;;  %s1675_s1 = inlined_call_operand.vmem [shape: f32[32,1], index: 1, kind: input, shape index: {}]   ;;  %s1676_s2 = inlined_call_operand.hbm [shape: bf16[300,512], index: 2, kind: input, shape index: {}]   ;;  %s1677_s3 = inlined_call_operand.vmem [shape: f32[8,512], index: 3, kind: input, shape index: {}]   ;;  %s1678_s4 = inlined_call_operand.hbm [shape: f32[8,512], index: 4, kind: output, shape index: {0}]   ;;  %s1679_s5 = inlined_call_operand.hbm [shape: f32[8,512], index: 5, kind: output, shape index: {1}]  }
   0x1   :  { %12 = vsyncpa [#allocation6], 0 }
   0x2   :  { %14 = vsyncpa [#allocation6 + $0x1], 0 }
   0x3   :  { %15 = vsyncpa [#allocation4], 0 }
   0x4   :  { %17 = vsyncpa [#allocation4 + $0x1], 0 }
   0x5   :  { %18 = vsyncpa [#allocation9], 0 }
   0x6   :  { %20 = vsyncpa [#allocation9 + $0x1], 0  ;;  %s1380_s18 = smov 0   ;;  %s1382_s19 = smov 0  }
   0x7   :  { %s1384_s20 = smov 0   ;;  %s1386_s21 = smov 0  }
   0x8 LB: > { %s1401_s22 = sadd.s32 4294967295, %s1338_s21   ;;  %s917_s23 = sadd.s32 4294967294, %s1338_s21   ;;  %s1338_s21 = sphi %s1386_s21, %s1703_s21   ;;  %s1334_s20 = sphi %s1384_s20, %s1702_s20   ;;  %s1330_s19 = sphi %s1382_s19, %s1701_s19   ;;  %s1326_s18 = sphi %s1380_s18, %s1700_s18  }
   0x9   : > { %s1405_s24 = sadd.s32 1, %s1338_s21   ;;  %s75_s25 = sadd.s32 1, %s1334_s20 }
   0xa   : > { %s72_s26 = ssub.s32 %s1338_s21, %s1405_s24  ;;  %p82_p0 = scmp.ne.s32.totalorder %s1334_s20, %s1330_s19 }
   0xb   : > { %p73_p1 = scmp.eq.s32.totalorder %s72_s26, 0  ;;  %p83_p2 = scmp.eq.s32.totalorder %s1338_s21, 0 }
   0xc   : > { %p88_p3 = scmp.ne.s32.totalorder %s1330_s19, %s1326_s18  ;;  %p1680_p4 = scmp.eq.s32.totalorder %s1401_s22, 0 }
   0xd   : > { %s1417_s27 = scalar_select %p73_p1, %s1334_s20, %s75_s25  }
   0xe   : > { %p1419_p5 = por %p83_p2, %p82_p0  ;;  %p1425_p6 = por %p1680_p4, %p88_p3 }
   0xf   : > { %p138_p7 = scmp.eq.s32.totalorder %s1401_s22, 1  ;;  %p144_p8 = scmp.eq.s32.totalorder %s917_s23, 1 }
  0x10   : > { %s1684_s28 = scalar_select %p1419_p5, 1, 0 }
  0x11   : > { %s1685_s29 = scalar_select %p1425_p6, 1, 0 }
  0x12   : > { %p918_p9 = scmp.ge.s32.totalorder %s1338_s21, 1  ;;  %p177_p10 = scmp.lt.s32.totalorder %s1338_s21, 3 }
  0x13   : > { %p1432_p11 = por %p138_p7, %p82_p0  ;;  %p1436_p12 = por %p144_p8, %p88_p3 }
  0x14   : > { %p1440_p13 = pnand %p918_p9, %p177_p10  ;;  %s1340_s8 = smov [#allocation2]  }
  0x15   : > { %s1686_s30 = scalar_select %p1432_p11, 1, 0 }
  0x16   : > { %s1687_s6 = scalar_select %p1436_p12, 1, 0 }
  0x17   : > { %s1688_s7 = scalar_select %p1440_p13, 1, 0 }
  0x18   : > { %p1021_p1 = pneg %p1440_p13  ;;  %s189_s9 = sshll.u32 %s1340_s8, 4  ;;  %s190_s9 = int_to_ptr.vmem [resolvable:$true] %s189_s9 }
  0x19   : > { %s206_s11 = sand.u32 1, %s1334_s20   ;;  %s1178_s14 = scalar_lea.hbm %s1674_s0, 768 }
  0x1a   : > { %p1448_p2 = pnand %p1021_p1, %p1680_p4  ;;  %p1179_p7 = scmp.ne.s32.totalorder %s1674_s0, %s1178_s14 }
  0x1b   : > { %p1185_p1 = scmp.lt.u32.totalorder %s1178_s14, %s1674_s0 }
  0x1c   : > { %p1180_p8 = pneg %p1448_p2 }
  0x1e   : > { %p1181_p9 = pnand %p1180_p8, %p1179_p7 }
  0x20   : > { %p1182_p10 = pneg %p1181_p9 }
  0x22   : > { %p1187_p4 = pnand %p1185_p1, %p1182_p10 }
  0x24   : > { %1190 = shalt.err (!%p1187_p4)
}
  0x25   : > { %s1191_s25 = scalar_lea.vmem %s190_s9, 768  ;;  %p1199_p11 = scmp.lt.s32.totalorder %s190_s9, %s190_s9 }
  0x26   : > { %p1192_p0 = scmp.ne.s32.totalorder %s190_s9, %s1191_s25  ;;  %p1200_p6 = scmp.lt.s32.totalorder %s1191_s25, %s1191_s25 }
  0x28   : > { %p1194_p3 = pnand %p1192_p0, %p1180_p8  ;;  %p1201_p13 = por %p1200_p6, %p1199_p11 }
  0x2a   : > { %p1195_p12 = pneg %p1194_p3 }
  0x2c   : > { %p1202_p5 = pnand %p1201_p13, %p1195_p12 }
  0x2e   : > { %1205 = shalt.err (!%p1202_p5)
}
  0x2f   : > { %s1341_s26 = smov 192   ;;  %s1342_s8 = smov 12  }
  0x30   : > { %1024 = dma.hbm_to_vmem [thread:$0]  (!%p1448_p2), %s1674_s0, 768, %s190_s9, [#allocation3], %s1341_s26, %s1341_s26, %s1342_s8  }
  0x31   : > { %p1690_p4 = scmp.ne.s32.totalorder %s1684_s28, 0  ;;  %p1691_p7 = scmp.lt.s32.totalorder %s1338_s21, 2 }
  0x32   : > { %s1009_s15 = smul.u32 304, %s206_s11  ;;  %s990_s16 = sshll.u32 %s1338_s21, 7 }
  0x33   : > { %p1475_p0 = pnand %p1691_p7, %p1690_p4  ;;  %s1483_s25 = scalar_lea.hbm %s1676_s2, %s990_s16 }
  0x34   : > { %s210_s9 = scalar_lea.vmem [#allocation5], %s1009_s15  ;;  %s1487_s10 = scalar_lea.sflag [#allocation6], %s206_s11 }
  0x35   : > { %s217_s28 = sshll.u32 %s210_s9, 4  ;;  %s1206_s26 = scalar_lea.hbm %s1483_s25, 4864  ;;  %s1485_s28 = int_to_ptr.vmem [resolvable:$true] %s217_s28 }
  0x36   : > { %p1207_p5 = scmp.ne.s32.totalorder %s1483_s25, %s1206_s26  ;;  %p1208_p6 = pneg %p1475_p0 }
  0x37   : > { %s1211_s13 = scalar_lea.hbm %s1676_s2, 9728  ;;  %p1212_p13 = scmp.lt.u32.totalorder %s1483_s25, %s1676_s2 }
  0x38   : > { %p1209_p11 = pnand %p1208_p6, %p1207_p5  ;;  %p1213_p2 = scmp.lt.u32.totalorder %s1211_s13, %s1206_s26 }
  0x39   : > { %p1215_p8 = scmp.lt.u32.totalorder %s1206_s26, %s1483_s25 }
  0x3a   : > { %p1210_p12 = pneg %p1209_p11  ;;  %p1214_p3 = por %p1213_p2, %p1212_p13 }
  0x3c   : > { %p1216_p9 = por %p1215_p8, %p1214_p3 }
  0x3e   : > { %p1217_p10 = pnand %p1216_p9, %p1210_p12 }
  0x40   : > { %1220 = shalt.err (!%p1217_p10)
}
  0x41   : > { %s1221_s11 = scalar_lea.vmem %s1485_s28, 4864  ;;  %s1343_s15 = smov [#allocation5]  }
  0x42   : > { %p1222_p1 = scmp.ne.s32.totalorder %s1485_s28, %s1221_s11  ;;  %s1226_s23 = sshll.u32 %s1343_s15, 4  ;;  %s1227_s23 = int_to_ptr.vmem [resolvable:$false] %s1226_s23 }
  0x43   : > { %s1228_s9 = scalar_lea.vmem %s1227_s23, 9728  ;;  %p1229_p5 = scmp.lt.s32.totalorder %s1485_s28, %s1227_s23 }
  0x44   : > { %p1224_p4 = pnand %p1222_p1, %p1208_p6  ;;  %p1230_p11 = scmp.lt.s32.totalorder %s1228_s9, %s1221_s11 }
  0x46   : > { %p1225_p7 = pneg %p1224_p4  ;;  %p1231_p13 = por %p1230_p11, %p1229_p5 }
  0x48   : > { %p1232_p2 = pnand %p1231_p13, %p1225_p7 }
  0x4a   : > { %1235 = shalt.err (!%p1232_p2)
}
  0x4b   : > { %s1344_s26 = smov 256   ;;  %s1345_s8 = smov 128  }
  0x4c   : > { %s1346_s12 = smov 8   ;;  %p1693_p6 = scmp.ne.s32.totalorder %s1688_s7, 0 }
  0x4d   : > { %1028 = dma.hbm_to_vmem [thread:$0]  (!%p1475_p0), %s1483_s25, 4864, %s1485_s28, %s1487_s10, %s1344_s26, %s1345_s8, %s1346_s12  }
  0x4e   : > { %238 = sbr.rel (%p1693_p6) target bundleno = 444 (0x1bc), region = 36  ;;  %p1694_p12 = scmp.eq.s32.totalorder (!%p1693_p6), %s1401_s22, 0 }
  0x55   : > { %1309 = dma.done.wait (%p1694_p12), [#allocation3], 768   ;;  %p1695_p3 = pmov %p1694_p12 }
  0x56   : > { %s1522_s13 = sand.u32 1, %s1330_s19   ;;  %p1696_p0 = scmp.ne.s32.totalorder %s1685_s29, 0 }
  0x57   : > { %1311 = vsyncadd (%p1695_p3), [#allocation3], 4294966528  ;;  %s1010_s16 = smul.u32 304, %s1522_s13  ;;  %s245_s17 = scalar_lea.sflag [#allocation6], %s1522_s13 }
  0x59   : > { %s1526_s11 = scalar_lea.vmem [#allocation5], %s1010_s16 }
  0x5a   : > { %1313 = dma.done.wait (%p1696_p0), %s245_s17, 4864  }
  0x5b   : > { %1315 = vsyncadd (%p1696_p0), %s245_s17, 4294962432  ;;  %v1347_v0 = vmov 0   ;;  %v1081_v1 = vld [vmem:[%s1526_s11 + $0x4] ss:$8 sps:$4 sm:$0xff]   ;;  %v1083_v2 = vld [vmem:[%s1526_s11] ss:$8 sps:$4 sm:$0xff]  }
  0x5c   : > { %682 = vmatprep.mubr.bf16.mxu0 %v1347_v0  ;;  %1079 = vset.pattern.permute.xlu0 %v1347_v0  ;;  %v1084_v3 = vld [vmem:[%s1526_s11 + $0x14] ss:$8 sps:$4 sm:$0xff]   ;;  %v1086_v4 = vld [vmem:[%s1526_s11 + $0x10] ss:$8 sps:$4 sm:$0xff]   ;;  %v1087_v5 = vld [vmem:[%s1526_s11 + $0x24] ss:$8 sps:$4 sm:$0xff]  }
  0x5d   : > { %1080 = vset.pattern.permute.xlu1 %v1347_v0  ;;  %597 = vmatprep.subr.bf16.mxu1 %v1081_v1  ;;  %v1089_v6 = vld [vmem:[%s1526_s11 + $0x20] ss:$8 sps:$4 sm:$0xff]   ;;  %v1090_v7 = vld [vmem:[%s1526_s11 + $0x34] ss:$8 sps:$4 sm:$0xff]   ;;  %v1092_v8 = vld [vmem:[%s1526_s11 + $0x30] ss:$8 sps:$4 sm:$0xff]  }
  0x5e   : > { %598 = vmatpush1.bf16.msra.mxu1 %v1083_v2  ;;  %v1093_v9 = vld [vmem:[%s1526_s11 + $0x44] ss:$8 sps:$4 sm:$0xff]   ;;  %v1095_v10 = vld [vmem:[%s1526_s11 + $0x40] ss:$8 sps:$4 sm:$0xff]   ;;  %v1096_v11 = vld [vmem:[%s1526_s11 + $0x54] ss:$8 sps:$4 sm:$0xff]  }
  0x5f   : > { %599 = vmatprep.subr.bf16.mxu1 %v1084_v3  ;;  %v1120_v12 = vld [vmem:[%s1526_s11 + $0x104] ss:$8 sps:$4 sm:$0xff]   ;;  %v1098_v13 = vld [vmem:[%s1526_s11 + $0x50] ss:$8 sps:$4 sm:$0xff]   ;;  %v1124_v15 = vld [vmem:[%s1526_s11 + $0x100] ss:$8 sps:$4 sm:$0xff]  }
  0x60   : > { %v1099_v14 = vld [vmem:[%s1526_s11 + $0x64] ss:$8 sps:$4 sm:$0xff]   ;;  %650 = vmatprep.subr.bf16.mxu0 %v1120_v12  ;;  %v1126_v16 = vld [vmem:[%s1526_s11 + $0x114] ss:$8 sps:$4 sm:$0xff]   ;;  %v1101_v17 = vld [vmem:[%s1526_s11 + $0x60] ss:$8 sps:$4 sm:$0xff]  }
  0x61   : > { %651 = vmatpush1.bf16.msra.mxu0 %v1124_v15  ;;  %v1130_v18 = vld [vmem:[%s1526_s11 + $0x110] ss:$8 sps:$4 sm:$0xff]   ;;  %vm590_vm0 = vcmask 1045504   ;;  %v1132_v19 = vld [vmem:[%s1526_s11 + $0x124] ss:$8 sps:$4 sm:$0x3f]  }
  0x62   : > { %600 = vmatpush1.bf16.msra.mxu1 %v1086_v4  ;;  %652 = vmatprep.subr.bf16.mxu0 %v1126_v16  ;;  %v1102_v20 = vld [vmem:[%s1526_s11 + $0x74] ss:$8 sps:$4 sm:$0xff]   ;;  %v1136_v21 = vld [vmem:[%s1526_s11 + $0x120] ss:$8 sps:$4 sm:$0x3f]   ;;  %vm583_vm1 = vcmask 359424  }
  0x63   : > { %601 = vmatprep.subr.bf16.mxu1 %v1087_v5  ;;  %v592_v22 = vsel %vm590_vm0, %v1136_v21, 0  ;;  %v1140_v23 = vld [vmem:[#allocation2 + $0x4] ss:$12 sps:$4 sm:$0xff]   ;;  %v1141_v26 = vld [vmem:[#allocation2 + $0x8] ss:$12 sps:$4 sm:$0xff]   ;;  %v344_v32 = vld [vmem:[%s1675_s1 + $0x18] sm:$0xff] }
  0x64   : > { %v1104_v24 = vld [vmem:[%s1526_s11 + $0x70] ss:$8 sps:$4 sm:$0xff]   ;;  %v1105_v25 = vld [vmem:[%s1526_s11 + $0x84] ss:$8 sps:$4 sm:$0xff]   ;;  %629 = vmatprep.mubr.bf16.mxu1 %v1140_v23  ;;  %v1107_v29 = vld [vmem:[%s1526_s11 + $0x80] ss:$8 sps:$4 sm:$0xff]  }
  0x65   : > { %653 = vmatpush1.bf16.msra.mxu0 %v1130_v18  ;;  %v341_v27 = vld [vmem:[%s1675_s1] sm:$0xff]  ;;  %v343_v28 = vld [vmem:[%s1675_s1 + $0x10] sm:$0xff]  ;;  %v342_v31 = vld [vmem:[%s1675_s1 + $0x8] sm:$0xff]  ;;  %s927_s9 = sshll.u32 %s1401_s22, 1  ;;  %s925_s17 = sshll.u32 %s1522_s13, 4 }
  0x66   : > { %602 = vmatpush1.bf16.msra.mxu1 %v1089_v6  ;;  %973 = vmatprep.subr.msk.bf16.mxu0 %vm590_vm0, %v1132_v19  ;;  %v1108_v30 = vld [vmem:[%s1526_s11 + $0x94] ss:$8 sps:$4 sm:$0xff]   ;;  %v1110_v33 = vld [vmem:[%s1526_s11 + $0x90] ss:$8 sps:$4 sm:$0xff]   ;;  %v1111_v34 = vld [vmem:[%s1526_s11 + $0xa4] ss:$8 sps:$4 sm:$0xff]  }
  0x67   : > { %603 = vmatprep.subr.bf16.mxu1 %v1090_v7  ;;  %347 = vperm.xlu0 %1079, %v341_v27   ;;  %v1145_v35 = vld [vmem:[#allocation2 + $0x20] ss:$12 sps:$4 sm:$0xff]   ;;  %v1142_v48 = vld [vmem:[#allocation2 + $0x1c] ss:$12 sps:$4 sm:$0xff]   ;;  %v1144_v49 = vld [vmem:[#allocation2 + $0x18] ss:$12 sps:$4 sm:$0xff]  }
  0x68   : > { %357 = vperm.xlu1 %1080, %v343_v28   ;;  %v1113_v36 = vld [vmem:[%s1526_s11 + $0xa0] ss:$8 sps:$4 sm:$0xff]   ;;  %v1114_v37 = vld [vmem:[%s1526_s11 + $0xb4] ss:$8 sps:$4 sm:$0xff]   ;;  %v1116_v38 = vld [vmem:[%s1526_s11 + $0xb0] ss:$8 sps:$4 sm:$0xff]  }
  0x69   : > { %655 = vmatpush1.bf16.msra.mxu0 %v592_v22  ;;  %v1117_v39 = vld [vmem:[%s1526_s11 + $0xc4] ss:$8 sps:$4 sm:$0xff]   ;;  %v1119_v40 = vld [vmem:[%s1526_s11 + $0xc0] ss:$8 sps:$4 sm:$0xff]   ;;  %v1122_v41 = vld [vmem:[%s1526_s11 + $0xd4] ss:$8 sps:$4 sm:$0xff]  }
  0x6a   : > { %604 = vmatpush1.bf16.msra.mxu1 %v1092_v8  ;;  %v1125_v42 = vld [vmem:[%s1526_s11 + $0xd0] ss:$8 sps:$4 sm:$0xff]   ;;  %v1128_v43 = vld [vmem:[%s1526_s11 + $0xe4] ss:$8 sps:$4 sm:$0xff]   ;;  %v1131_v44 = vld [vmem:[%s1526_s11 + $0xe0] ss:$8 sps:$4 sm:$0xff]  }
  0x6b   : > { %605 = vmatprep.subr.bf16.mxu1 %v1093_v9  ;;  %352 = vperm.xlu0 %1079, %v342_v31   ;;  %v1134_v45 = vld [vmem:[%s1526_s11 + $0xf4] ss:$8 sps:$4 sm:$0xff]   ;;  %v1137_v46 = vld [vmem:[%s1526_s11 + $0xf0] ss:$8 sps:$4 sm:$0xff]   ;;  %p287_p8 = scmp.lt.s32.totalorder %s927_s9, 3  ;;  %s991_s11 = sshll.u32 %s1401_s22, 8 }
  0x6c   : > { %974 = vmatmul.mubr.msk.bf16.vlgmr.msra.gmra.mrb[0].mxu0 %vm583_vm1, %v1141_v26  ;;  %362 = vperm.xlu1 %1080, %v344_v32   ;;  %v1138_v47 = vld [vmem:[#allocation2] ss:$12 sps:$4 sm:$0xff]   ;;  %s284_s29 = scalar_lea.vmem [#allocation8], %s925_s17  ;;  %s1597_s28 = scalar_lea.hbm %s1679_s5, %s991_s11 }
  0x6d   : > { %692 = vmatprep.mubr.bf16.mxu0 %v1347_v0  ;;  %s1705_s9 = smov (!%p287_p8, %s927_s9), 3  ;;  %s791_s7 = sshll.u32 %s284_s29, 4  ;;  %s1599_s7 = int_to_ptr.vmem [resolvable:$true] %s791_s7 }
  0x6e   : > { %606 = vmatpush1.bf16.msra.mxu1 %v1095_v10  ;;  %s928_s26 = sshll.u32 %s1705_s9, 3  ;;  %s763_s10 = scalar_lea.sflag [#allocation9], %s1522_s13 }
  0x6f   : > { %607 = vmatprep.subr.bf16.mxu1 %v1096_v11  ;;  %s290_s16 = scalar_lea.vmem %s1677_s3, %s928_s26  ;;  %s1236_s15 = scalar_lea.vmem %s1599_s7, 256 }
  0x70   : > { %p1237_p9 = scmp.ne.s32.totalorder %s1599_s7, %s1236_s15  ;;  %p1697_p10 = scmp.ne.s32.totalorder %s1686_s30, 0 }
  0x71   : > { %s1348_s23 = smov [#allocation8]  }
  0x72   : > { %608 = vmatpush1.bf16.msra.mxu1 %v1098_v13  ;;  %p1238_p1 = pnand %p1237_p9, %p1697_p10  ;;  %s1240_s9 = sshll.u32 %s1348_s23, 4  ;;  %s1241_s9 = int_to_ptr.vmem [resolvable:$false] %s1240_s9 }
  0x73   : > { %609 = vmatprep.subr.bf16.mxu1 %v1099_v14  ;;  %s1242_s26 = scalar_lea.vmem %s1241_s9, 512  ;;  %p1243_p7 = scmp.lt.s32.totalorder %s1599_s7, %s1241_s9 }
  0x74   : > { %975 = vmatmul.mubr.msk.bf16.gmra.mrb[4].mxu0 %vm583_vm1, %v1145_v35  ;;  %p1239_p4 = pneg %p1238_p1  ;;  %p1244_p5 = scmp.lt.s32.totalorder %s1242_s26, %s1236_s15 }
  0x76   : > { %610 = vmatpush1.bf16.msra.mxu1 %v1101_v17  ;;  %p1245_p11 = por %p1244_p5, %p1243_p7 }
  0x77   : > { %611 = vmatprep.subr.bf16.mxu1 %v1102_v20 }
  0x78   : > { %p1246_p13 = pnand %p1245_p11, %p1239_p4 }
  0x7a   : > { %612 = vmatpush1.bf16.msra.mxu1 %v1104_v24 }
  0x7b   : > { %613 = vmatprep.subr.bf16.mxu1 %v1105_v25 }
  0x7e   : > { %614 = vmatpush1.bf16.msra.mxu1 %v1107_v29 }
  0x7f   : > { %615 = vmatprep.subr.bf16.mxu1 %v1108_v30 }
  0x82   : > { %616 = vmatpush1.bf16.msra.mxu1 %v1110_v33 }
  0x83   : > { %617 = vmatprep.subr.bf16.mxu1 %v1111_v34 }
  0x86   : > { %618 = vmatpush1.bf16.msra.mxu1 %v1113_v36 }
  0x87   : > { %619 = vmatprep.subr.bf16.mxu1 %v1114_v37 }
  0x8a   : > { %620 = vmatpush1.bf16.msra.mxu1 %v1116_v38 }
  0x8b   : > { %621 = vmatprep.subr.bf16.mxu1 %v1117_v39 }
  0x8e   : > { %622 = vmatpush1.bf16.msra.mxu1 %v1119_v40 }
  0x8f   : > { %623 = vmatprep.subr.bf16.mxu1 %v1122_v41  ;;  %v741_v41 = vld [vmem:[%s290_s16] sm:$0xff] }
  0x92   : > { %624 = vmatpush1.bf16.msra.mxu1 %v1125_v42 }
  0x93   : > { %625 = vmatprep.subr.bf16.mxu1 %v1128_v43 }
  0x96   : > { %626 = vmatpush1.bf16.msra.mxu1 %v1131_v44 }
  0x97   : > { %627 = vmatprep.subr.bf16.mxu1 %v1134_v45  ;;  %v742_v45 = vld [vmem:[%s290_s16 + $0x8] sm:$0xff] }
  0x9a   : > { %628 = vmatpush1.bf16.msra.mxu1 %v1137_v46 }
  0x9d   : > { %630 = vmatmul.mubr.bf16.vlgmr.msra.gmra.mrb[0].mxu1 %v1138_v47 }
  0x9e   : > { %639 = vmatprep.mubr.bf16.mxu1 %v1142_v48 }
  0xa5   : > { %640 = vmatmul.mubr.bf16.gmra.mrb[4].mxu1 %v1144_v49 }
  0xe6   : > { %v348_v58 = vpop.permute.xlu0 %347 }
  0xe7   : > { %v358_v62 = vpop.permute.xlu1 %357 }
  0xea   : > { %v353_v63 = vpop.permute.xlu0 %352 }
  0xeb   : > { %v363_v14 = vpop.permute.xlu1 %362 }
 0x13f   : > { %v684_v50 = vpop.f32.mrb[0].mxu0 }
 0x140   : > { %v686_v51 = vpop.f32.mrb[1].mxu0 }
 0x141   : > { %v688_v52 = vpop.f32.mrb[2].mxu0 }
 0x142   : > { %v690_v53 = vpop.f32.mrb[3].mxu0 }
 0x147   : > { %v694_v54 = vpop.f32.mrb[4].mxu0 }
 0x148   : > { %v696_v55 = vpop.f32.mrb[5].mxu0 }
 0x149   : > { %v698_v56 = vpop.f32.mrb[6].mxu0 }
 0x14a   : > { %v700_v57 = vpop.f32.mrb[7].mxu0 }
 0x170   : > { %v631_v59 = vpop.f32.mrb[0].mxu1 }
 0x171   : > { %v632_v60 = vadd.f32 %v631_v59, %v348_v58  ;;  %v633_v61 = vpop.f32.mrb[1].mxu1 }
 0x172   : > { %v634_v0 = vadd.f32 %v633_v61, %v348_v58  ;;  %v635_v1 = vpop.f32.mrb[2].mxu1 }
 0x173   : > { %v685_v2 = vadd.f32 %v684_v50, %v632_v60  ;;  %v636_v3 = vadd.f32 %v635_v1, %v353_v63  ;;  %v637_v4 = vpop.f32.mrb[3].mxu1 }
 0x174   : > { %v687_v5 = vadd.f32 %v686_v51, %v634_v0  ;;  %v638_v6 = vadd.f32 %v637_v4, %v353_v63 }
 0x175   : > { %v976_v7 = vmul.f32 -1.442695, %v685_v2  ;;  %v689_v8 = vadd.f32 %v688_v52, %v636_v3 }
 0x176   : > { %v977_v9 = vmul.f32 -1.442695, %v687_v5  ;;  %v691_v10 = vadd.f32 %v690_v53, %v638_v6 }
 0x177   : > { %1146 = vpow2.f32 %v976_v7  ;;  %v978_v11 = vmul.f32 -1.442695, %v689_v8 }
 0x178   : > { %1148 = vpow2.f32 %v977_v9  ;;  %v979_v12 = vmul.f32 -1.442695, %v691_v10  ;;  %v641_v13 = vpop.f32.mrb[4].mxu1 }
 0x179   : > { %1150 = vpow2.f32 %v978_v11  ;;  %v642_v15 = vadd.f32 %v641_v13, %v358_v62  ;;  %v643_v16 = vpop.f32.mrb[5].mxu1 }
 0x17a   : > { %1152 = vpow2.f32 %v979_v12  ;;  %v644_v17 = vadd.f32 %v643_v16, %v358_v62  ;;  %v645_v18 = vpop.f32.mrb[6].mxu1 }
 0x17b   : > { %v695_v19 = vadd.f32 %v694_v54, %v642_v15  ;;  %v646_v20 = vadd.f32 %v645_v18, %v363_v14  ;;  %v647_v21 = vpop.f32.mrb[7].mxu1 }
 0x17c   : > { %v648_v22 = vadd.f32 %v647_v21, %v363_v14  ;;  %v697_v23 = vadd.f32 %v696_v55, %v644_v17 }
 0x17d   : > { %v980_v24 = vmul.f32 -1.442695, %v695_v19  ;;  %v699_v25 = vadd.f32 %v698_v56, %v646_v20 }
 0x17e   : > { %v981_v26 = vmul.f32 -1.442695, %v697_v23  ;;  %v701_v27 = vadd.f32 %v700_v57, %v648_v22 }
 0x17f   : > { %1154 = vpow2.f32 %v980_v24 }
 0x180   : > { %1156 = vpow2.f32 %v981_v26 }
 0x181   : > { %v1147_v28 = vpop.eup %1146  ;;  %1158 = vtanh.f32 %v699_v25 }
 0x182   : > { %v1149_v29 = vpop.eup %1148  ;;  %v709_v30 = vadd.f32 1.0, %v1147_v28  ;;  %1160 = vtanh.f32 %v701_v27 }
 0x183   : > { %v1151_v31 = vpop.eup %1150  ;;  %v710_v32 = vadd.f32 1.0, %v1149_v29 }
 0x184   : > { %v1153_v33 = vpop.eup %1152  ;;  %1162 = vrcp.f32 %v709_v30  ;;  %v721_v34 = vadd.f32 1.0, %v1151_v31 }
 0x185   : > { %1164 = vrcp.f32 %v710_v32  ;;  %v722_v35 = vadd.f32 1.0, %v1153_v33 }
 0x186   : > { %1166 = vrcp.f32 %v721_v34 }
 0x187   : > { %1168 = vrcp.f32 %v722_v35 }
 0x189   : > { %v1155_v36 = vpop.eup %1154 }
 0x18a   : > { %v1157_v37 = vpop.eup %1156  ;;  %v733_v43 = vadd.f32 1.0, %v1155_v36 }
 0x18b   : > { %v1159_v38 = vpop.eup %1158  ;;  %v734_v47 = vadd.f32 1.0, %v1157_v37 }
 0x18c   : > { %v1161_v39 = vpop.eup %1160  ;;  %1170 = vrcp.f32 %v733_v43 }
 0x18d   : > { %1172 = vrcp.f32 %v734_v47 }
 0x18e   : > { %v1163_v40 = vpop.eup %1162 }
 0x18f   : > { %v1165_v42 = vpop.eup %1164  ;;  %v745_v44 = vmul.f32 %v1163_v40, %v1159_v38 }
 0x190   : > { %v1167_v46 = vpop.eup %1166  ;;  %v746_v48 = vmul.f32 %v1165_v42, %v1161_v39 }
 0x191   : > { %v1169_v49 = vpop.eup %1168  ;;  %v743_v50 = vmul.f32 %v1167_v46, %v741_v41 }
 0x192   : > { %v744_v51 = vmul.f32 %v1169_v49, %v742_v45 }
 0x193   : > { %v747_v52 = vadd.f32 %v745_v44, %v743_v50 }
 0x194   : > { %v748_v53 = vadd.f32 %v746_v48, %v744_v51 }
 0x195   : > { %1174 = vtanh.f32 %v747_v52  ;;  %753 = vst [vmem:[%s284_s29] sm:$0xff] %v747_v52 }
 0x196   : > { %1176 = vtanh.f32 %v748_v53  ;;  %754 = vst [vmem:[%s284_s29 + $0x8] sm:$0xff] %v748_v53 }
 0x197   : > { %1249 = shalt.err (!%p1246_p13)
}
 0x198   : > { %s1250_s8 = scalar_lea.hbm %s1597_s28, 256  ;;  %s1254_s29 = scalar_lea.hbm %s1679_s5, 512 }
 0x199   : > { %p1251_p2 = scmp.ne.s32.totalorder %s1597_s28, %s1250_s8  ;;  %p1255_p3 = scmp.lt.u32.totalorder %s1597_s28, %s1679_s5 }
 0x19a   : > { %p1256_p0 = scmp.lt.u32.totalorder %s1254_s29, %s1250_s8  ;;  %p1258_p9 = scmp.lt.u32.totalorder %s1250_s8, %s1597_s28 }
 0x19b   : > { %p1252_p6 = pnand %p1251_p2, %p1697_p10 }
 0x19c   : > { %p1257_p8 = por %p1256_p0, %p1255_p3 }
 0x19d   : > { %p1253_p12 = pneg %p1252_p6 }
 0x19e   : > { %p1259_p1 = por %p1258_p9, %p1257_p8 }
 0x1a0   : > { %p1260_p4 = pnand %p1259_p1, %p1253_p12 }
 0x1a2   : > { %1263 = shalt.err (!%p1260_p4)
}
 0x1a3   : > { %1018 = dma.vmem_to_hbm [thread:$0]  (%p1697_p10), %s1599_s7, 256, %s1597_s28, %s763_s10   ;;  %v1171_v54 = vpop.eup %1170 }
 0x1a4   : > { %v1173_v55 = vpop.eup %1172  ;;  %s277_s15 = scalar_lea.vmem [#allocation7], %s925_s17  ;;  %s1630_s8 = scalar_lea.hbm %s1678_s4, %s991_s11 }
 0x1a5   : > { %s777_s23 = sshll.u32 %s277_s15, 4  ;;  %v1175_v56 = vpop.eup %1174  ;;  %s758_s7 = scalar_lea.sflag [#allocation4], %s1522_s13  ;;  %s1632_s23 = int_to_ptr.vmem [resolvable:$true] %s777_s23 }
 0x1a6   : > { %v1177_v57 = vpop.eup %1176  ;;  %v751_v58 = vmul.f32 %v1175_v56, %v1171_v54  ;;  %s1264_s17 = scalar_lea.vmem %s1632_s23, 256  ;;  %s1349_s28 = smov [#allocation7]  }
 0x1a7   : > { %v752_v59 = vmul.f32 %v1177_v57, %v1173_v55  ;;  %p1265_p7 = scmp.ne.s32.totalorder %s1632_s23, %s1264_s17  ;;  %s1268_s22 = sshll.u32 %s1349_s28, 4  ;;  %s1269_s22 = int_to_ptr.vmem [resolvable:$false] %s1268_s22 }
 0x1a8   : > { %755 = vst [vmem:[%s277_s15] sm:$0xff] %v751_v58  ;;  %s1270_s10 = scalar_lea.vmem %s1269_s22, 512  ;;  %p1271_p13 = scmp.lt.s32.totalorder %s1632_s23, %s1269_s22 }
 0x1a9   : > { %756 = vst [vmem:[%s277_s15 + $0x8] sm:$0xff] %v752_v59  ;;  %p1266_p5 = pnand %p1265_p7, %p1697_p10  ;;  %p1272_p2 = scmp.lt.s32.totalorder %s1270_s10, %s1264_s17 }
 0x1ab   : > { %p1267_p11 = pneg %p1266_p5  ;;  %p1273_p6 = por %p1272_p2, %p1271_p13 }
 0x1ad   : > { %p1274_p12 = pnand %p1273_p6, %p1267_p11 }
 0x1af   : > { %1277 = shalt.err (!%p1274_p12)
}
 0x1b0   : > { %s1278_s13 = scalar_lea.hbm %s1630_s8, 256  ;;  %s1282_s16 = scalar_lea.hbm %s1678_s4, 512 }
 0x1b1   : > { %p1279_p3 = scmp.ne.s32.totalorder %s1630_s8, %s1278_s13  ;;  %p1283_p9 = scmp.lt.u32.totalorder %s1630_s8, %s1678_s4 }
 0x1b2   : > { %p1284_p1 = scmp.lt.u32.totalorder %s1282_s16, %s1278_s13  ;;  %p1286_p7 = scmp.lt.u32.totalorder %s1278_s13, %s1630_s8 }
 0x1b3   : > { %p1280_p0 = pnand %p1279_p3, %p1697_p10 }
 0x1b4   : > { %p1285_p4 = por %p1284_p1, %p1283_p9 }
 0x1b5   : > { %p1281_p8 = pneg %p1280_p0 }
 0x1b6   : > { %p1287_p5 = por %p1286_p7, %p1285_p4 }
 0x1b8   : > { %p1288_p11 = pnand %p1287_p5, %p1281_p8 }
 0x1ba   : > { %1291 = shalt.err (!%p1288_p11)
}
 0x1bb   : > { %1017 = dma.vmem_to_hbm [thread:$0]  (%p1697_p10), %s1632_s23, 256, %s1630_s8, %s758_s7  }
 0x1bc PF: > { %s803_s25 = sand.u32 1, %s1326_s18   ;;  %p1698_p13 = scmp.ne.s32.totalorder %s1687_s6, 0 }
 0x1bd   : > { %p1699_p2 = scmp.ge.s32.totalorder %s1338_s21, 2  ;;  %s804_s15 = scalar_lea.sflag [#allocation4], %s803_s25 }
 0x1bf   : > { %p1030_p6 = pnand %p1699_p2, %p1698_p13 }
 0x1c1   : > { %1317 = dma.done.wait (!%p1030_p6), %s804_s15, 256  }
 0x1c2   : > { %1319 = vsyncadd (!%p1030_p6), %s804_s15, 4294967040  ;;  %s813_s9 = scalar_lea.sflag [#allocation9], %s803_s25 }
 0x1c3   : > { %1321 = dma.done.wait (!%p1030_p6), %s813_s9, 256  }
 0x1c4   : > { %1323 = vsyncadd (!%p1030_p6), %s813_s9, 4294967040  ;;  %p23_p10 = scmp.ge.s32.totalorder %s1405_s24, 4   ;;  %s1700_s18 = smov %s1330_s19 }
 0x1c5   : > { %s1701_s19 = smov %s1334_s20  ;;  %s1702_s20 = smov %s1417_s27 }
 0x1c6   : > { %s1703_s21 = smov %s1405_s24  ;;  %25 = sbr.rel (!%p23_p10) target bundleno = 8 (0x8), region = 106 }
 0x1cd   :  { %818 = vsyncpa [#allocation3], 1 }
 0x1ce   :  { %820 = vsyncpa [#allocation3 + $0x1], 1 }
 0x1cf   :  { %821 = vsyncpa [#allocation6], 1 }
 0x1d0   :  { %823 = vsyncpa [#allocation6 + $0x1], 1 }
 0x1d1   :  { %824 = vsyncpa [#allocation4], 1 }
 0x1d2   :  { %826 = vsyncpa [#allocation4 + $0x1], 1 }
 0x1d3   :  { %827 = vsyncpa [#allocation9], 1 }
 0x1d4   :  { %829 = vsyncpa [#allocation9 + $0x1], 1 }

</bundles_post_ra>
